<compile_context>
chip_gen: v6e
topology: v6e:2x2x1
jax: 0.10.0
libtpu: 0.0.40
codegen_flags: <defaults>
</compile_context>

<pallas_src>
import jax
import jax.numpy as jnp
from jax.experimental import pallas as pl
from jax.experimental.pallas import tpu as pltpu

_TARGET_BLOCK_BYTES = 4 * 1024 * 1024   # ~4 MiB blocks; double-buffered in+out ~16 MiB


def _clamp_kernel(x_ref, t_ref, s_ref, o_ref):
    # x_ref: (tile_rows, lanes); t_ref/s_ref: (tile_rows, 1) or (1, lanes)
    x = x_ref[...]
    t = t_ref[...]
    s = s_ref[...]
    d = x - t
    # (d * s) > 0  <=>  (x > t & s > 0) | (x < t & s < 0)   for s in {-1, 0, +1}
    # (w_bn_sign is sign(bn.weight) by construction).  Using `d + t` (not `x`)
    # keeps bit-exactness with the reference (x - t) * mask + t.
    o_ref[...] = jnp.where(d * s > 0, d + t, t)


def _pick_rows_tile(rows, row_bytes, itemsize):
    """Row tile: dtype-aware sublane multiple, ~_TARGET_BLOCK_BYTES per block."""
    sub_mult = max(8, 32 // itemsize)            # 8 f32, 16 bf16, 32 int8/fp8
    t = max(1, _TARGET_BLOCK_BYTES // max(1, row_bytes))
    t = max((t // sub_mult) * sub_mult, sub_mult)
    if t >= rows:
        t = rows
        # v7x megacore: keep >= 2 grid steps when the slab is big enough that
        # splitting it across the two TensorCores pays for the per-step overhead.
        if rows >= 2 * sub_mult and rows * row_bytes > (512 << 10):
            t = min(rows, ((rows + 1) // 2 + sub_mult - 1) // sub_mult * sub_mult)
    return t


def _run_2d(x2d, t_arr, s_arr, t_block_shape, t_index_map, tile_rows):
    """Run the clamp kernel over a 2-D (rows, lanes) view with a 1-D grid."""
    rows, lanes = x2d.shape
    itemsize = jnp.dtype(x2d.dtype).itemsize
    block_bytes = tile_rows * lanes * itemsize
    param_bytes = 2 * t_block_shape[0] * t_block_shape[1] * itemsize
    # 2 buffers x (in + out) x block + double-buffered params + slack.
    vmem_limit = int(min(max(4 * block_bytes + 4 * param_bytes + (2 << 20),
                             8 << 20), 100 << 20))
    grid = (pl.cdiv(rows, tile_rows),)
    return pl.pallas_call(
        _clamp_kernel,
        out_shape=jax.ShapeDtypeStruct((rows, lanes), x2d.dtype),
        grid_spec=pltpu.PrefetchScalarGridSpec(
            num_scalar_prefetch=0,
            grid=grid,
            in_specs=[
                pl.BlockSpec((tile_rows, lanes), lambda i: (i, 0)),
                pl.BlockSpec(t_block_shape, t_index_map),
                pl.BlockSpec(t_block_shape, t_index_map),
            ],
            out_specs=pl.BlockSpec((tile_rows, lanes), lambda i: (i, 0)),
        ),
        compiler_params=pltpu.CompilerParams(
            dimension_semantics=("parallel",),
            vmem_limit_bytes=vmem_limit,
        ),
    )(x2d, t_arr, s_arr)


def clamp_layer(x_nchw, thresh, w_bn_sign):
    """ClampLayer forward (forconv=True semantics) on an NCHW tensor.

    x_nchw:     (N, C, H, W)
    thresh:     (C,) or (C,1,1)
    w_bn_sign:  (C,) or (C,1,1), values in {-1, 0, +1}
    """
    n, c, h, w = x_nchw.shape
    hw = h * w
    dtype = x_nchw.dtype
    itemsize = jnp.dtype(dtype).itemsize

    # Per-(sample, channel) parameter rows; a few KB, built once in the wrapper.
    t = jnp.tile(thresh.reshape(-1).astype(dtype), n)
    s = jnp.tile(w_bn_sign.reshape(-1).astype(dtype), n)

    if hw % 128 == 0:
        # Lane-dense path: fold N, C (and if needed a chunk of HW) into rows;
        # lane width L is a multiple of 128 capped near the block target.
        lanes = hw
        while lanes % 256 == 0 and lanes * itemsize > _TARGET_BLOCK_BYTES:
            lanes //= 2
        rep = hw // lanes
        if rep > 1:
            t = jnp.repeat(t, rep)
            s = jnp.repeat(s, rep)
        rows = n * c * rep
    else:
        # Fallback: lane axis = hw (masked tail lanes when hw % 128 != 0).
        # TODO(synk): run the backbone channels-last and use clamp_layer_nhwc
        # so 7x7-style maps stay lane-dense without a per-call transpose.
        lanes = hw
        rows = n * c

    x2d = x_nchw.reshape(rows, lanes)
    tile_rows = _pick_rows_tile(rows, lanes * itemsize, itemsize)
    out = _run_2d(x2d, t.reshape(rows, 1), s.reshape(rows, 1),
                  (tile_rows, 1), lambda i: (i, 0), tile_rows)
    return out.reshape(n, c, h, w)


def clamp_layer_nhwc(x_nhwc, thresh, w_bn_sign):
    """Channels-last ClampLayer forward: lane axis = C (lane-dense for C >= 128)."""
    n, h, w, c = x_nhwc.shape
    dtype = x_nhwc.dtype
    itemsize = jnp.dtype(dtype).itemsize
    rows = n * h * w
    x2d = x_nhwc.reshape(rows, c)
    tile_rows = _pick_rows_tile(rows, c * itemsize, itemsize)
    t = thresh.reshape(1, c).astype(dtype)     # broadcast across sublanes
    s = w_bn_sign.reshape(1, c).astype(dtype)
    out = _run_2d(x2d, t, s, (1, c), lambda i: (0, 0), tile_rows)
    return out.reshape(n, h, w, c)


def clamp_layer_ref(x, thresh, w_bn_sign):
    """Pure-JAX reference mirroring the PyTorch forward (NCHW)."""
    t = thresh.reshape(-1, 1, 1)
    s = w_bn_sign.reshape(-1, 1, 1)
    mask = ((x > t) & (s > 0)) | ((x < t) & (s < 0))
    return (x - t) * mask.astype(x.dtype) + t


if __name__ == "__main__":
    key = jax.random.PRNGKey(0)
    keys = jax.random.split(key, 9)

    def make_sign(k, c):
        sg = jnp.sign(jax.random.normal(k, (c,), dtype=jnp.float32))
        return jnp.where(sg == 0, 1.0, sg).astype(jnp.float32)

    # --- Path A: hw % 128 == 0 (lane-dense folded layout) ---
    N, C, H, W = 2, 4, 16, 16
    x = jax.random.normal(keys[0], (N, C, H, W), dtype=jnp.float32)
    thresh = jax.random.normal(keys[1], (C,), dtype=jnp.float32) * 0.5
    sgn = make_sign(keys[2], C)
    out = clamp_layer(x, thresh, sgn)
    jax.block_until_ready(out)
    ref = clamp_layer_ref(x, thresh, sgn)
    assert out.shape == (N, C, H, W)
    assert jnp.allclose(out, ref, atol=0, rtol=0), "mismatch vs reference (path A)"

    # --- Path B: hw % 128 != 0 fallback (7x7 map) ---
    N2, C2, H2, W2 = 2, 8, 7, 7
    x2 = jax.random.normal(keys[3], (N2, C2, H2, W2), dtype=jnp.float32)
    thresh2 = jax.random.normal(keys[4], (C2,), dtype=jnp.float32) * 0.5
    sgn2 = make_sign(keys[5], C2)
    out2 = clamp_layer(x2, thresh2, sgn2)
    jax.block_until_ready(out2)
    ref2 = clamp_layer_ref(x2, thresh2, sgn2)
    assert out2.shape == (N2, C2, H2, W2)
    assert jnp.allclose(out2, ref2, atol=0, rtol=0), "mismatch vs reference (path B)"

    # --- Channels-last entry point (model-level NHWC use; lane axis = C) ---
    N3, C3, H3, W3 = 2, 128, 7, 7
    x3 = jax.random.normal(keys[6], (N3, C3, H3, W3), dtype=jnp.float32)
    thresh3 = jax.random.normal(keys[7], (C3,), dtype=jnp.float32) * 0.5
    sgn3 = make_sign(keys[8], C3)
    out3 = clamp_layer_nhwc(jnp.transpose(x3, (0, 2, 3, 1)), thresh3, sgn3)
    jax.block_until_ready(out3)
    ref3 = clamp_layer_ref(x3, thresh3, sgn3)
    assert jnp.allclose(jnp.transpose(out3, (0, 3, 1, 2)), ref3, atol=0, rtol=0), \
        "mismatch vs reference (NHWC path)"

    print("KERNEL_OK")
</pallas_src>

<mosaic_0001>
module attributes {stable_mosaic.version = 11 : i64} {
  func.func @_clamp_kernel(%arg0: i32, %arg1: memref<8x256xf32, #tpu.memory_space<vmem>>, %arg2: memref<8x1xf32, #tpu.memory_space<vmem>>, %arg3: memref<8x1xf32, #tpu.memory_space<vmem>>, %arg4: memref<8x256xf32, #tpu.memory_space<vmem>>) attributes {dimension_semantics = [#tpu.dimension_semantics<parallel>], iteration_bounds = array<i64: 1>, scalar_prefetch = 0 : i64, scratch_operands = 0 : i64, tpu.core_type = #tpu.core_type<tc>, window_params = [{transform_indices = @transform_0, window_bounds = array<i64: 8, 256>}, {transform_indices = @transform_1, window_bounds = array<i64: 8, 1>}, {transform_indices = @transform_2, window_bounds = array<i64: 8, 1>}, {transform_indices = @transform_3, window_bounds = array<i64: 8, 256>}]} {
    %c0 = arith.constant 0 : index
    %c0_0 = arith.constant 0 : index
    %0 = vector.load %arg1[%c0, %c0_0] : memref<8x256xf32, #tpu.memory_space<vmem>>, vector<8x256xf32>
    %c0_1 = arith.constant 0 : index
    %c0_2 = arith.constant 0 : index
    %1 = vector.load %arg2[%c0_1, %c0_2] : memref<8x1xf32, #tpu.memory_space<vmem>>, vector<8x1xf32>
    %c0_3 = arith.constant 0 : index
    %c0_4 = arith.constant 0 : index
    %2 = vector.load %arg3[%c0_3, %c0_4] : memref<8x1xf32, #tpu.memory_space<vmem>>, vector<8x1xf32>
    %3 = vector.broadcast %1 : vector<8x1xf32> to vector<8x256xf32>
    %4 = arith.subf %0, %3 : vector<8x256xf32>
    %5 = vector.broadcast %2 : vector<8x1xf32> to vector<8x256xf32>
    %6 = arith.mulf %4, %5 : vector<8x256xf32>
    %cst = arith.constant 0.000000e+00 : f32
    %7 = vector.broadcast %cst : f32 to vector<8x256xf32>
    %8 = arith.cmpf ogt, %6, %7 : vector<8x256xf32>
    %9 = vector.broadcast %1 : vector<8x1xf32> to vector<8x256xf32>
    %10 = arith.addf %4, %9 : vector<8x256xf32>
    %11 = vector.shape_cast %1 : vector<8x1xf32> to vector<8x1xf32>
    %12 = vector.broadcast %11 : vector<8x1xf32> to vector<8x256xf32>
    %13 = arith.select %8, %10, %12 : vector<8x256xi1>, vector<8x256xf32>
    %c0_5 = arith.constant 0 : index
    %c0_6 = arith.constant 0 : index
    %14 = vector.load %arg4[%c0_5, %c0_6] : memref<8x256xf32, #tpu.memory_space<vmem>>, vector<8x256xf32>
    tpu.vector_store %arg4[%c0_5, %c0_6], %13 {strides = array<i32>} : memref<8x256xf32, #tpu.memory_space<vmem>>, vector<8x256xf32>,
    return
  }
  func.func @transform_0(%arg0: i32) -> (i32, i32) {
    %c0_i32 = arith.constant 0 : i32
    %c0_i32_0 = arith.constant 0 : i32
    return %arg0, %c0_i32 : i32, i32
  }
  func.func @transform_1(%arg0: i32) -> (i32, i32) {
    %c0_i32 = arith.constant 0 : i32
    %c0_i32_0 = arith.constant 0 : i32
    return %arg0, %c0_i32 : i32, i32
  }
  func.func @transform_2(%arg0: i32) -> (i32, i32) {
    %c0_i32 = arith.constant 0 : i32
    %c0_i32_0 = arith.constant 0 : i32
    return %arg0, %c0_i32 : i32, i32
  }
  func.func @transform_3(%arg0: i32) -> (i32, i32) {
    %c0_i32 = arith.constant 0 : i32
    %c0_i32_0 = arith.constant 0 : i32
    return %arg0, %c0_i32 : i32, i32
  }
}

</mosaic_0001>

<bundles_post_ra>
// kernel: tpu_custom_call.1
= control target key start
LH: loop header
LB: loop body
LE: loop exit
PB: predicated region body
PF: predicated region fallthrough
CT: control target
= control target key end

     0   :  { %v80_v1 = vmov 0   ;;  %s117_s0 = inlined_call_operand.vmem [shape: f32[8,256], index: 0, kind: input, shape index: {}]   ;;  %s118_s1 = inlined_call_operand.vmem [shape: f32[8,1], index: 1, kind: input, shape index: {}]   ;;  %s119_s2 = inlined_call_operand.vmem [shape: f32[8,1], index: 2, kind: input, shape index: {}]   ;;  %s120_s3 = inlined_call_operand.hbm [shape: f32[8,256], index: 3, kind: output, shape index: {}]  }
   0x1   :  { %v17_v0 = vld [vmem:[%s118_s1] sm:$0xff]  ;;  %57 = vset.pattern.permute.xlu0 %v80_v1 }
   0x2   :  { %8 = vsyncpa [#allocation3], 0  ;;  %21 = vperm.xlu0 %57, %v17_v0   ;;  %v18_v2 = vld [vmem:[%s119_s2] sm:$0xff]  ;;  %v16_v4 = vld [vmem:[%s117_s0 + $0x8] sm:$0xff]  ;;  %s81_s1 = smov [#allocation2]  }
   0x3   :  { %v15_v3 = vld [vmem:[%s117_s0] sm:$0xff]  ;;  %s47_s20 = sshll.u32 %s81_s1, 4  ;;  %s48_s20 = int_to_ptr.vmem [resolvable:$true] %s47_s20 }
   0x4   :  { %s58_s2 = scalar_lea.vmem %s48_s20, 256  ;;  %p63_p1 = scmp.lt.s32.totalorder %s48_s20, %s48_s20 }
   0x5   :  { %p59_p0 = scmp.ne.s32.totalorder %s48_s20, %s58_s2  ;;  %p64_p2 = scmp.lt.s32.totalorder %s58_s2, %s58_s2 }
   0x6   :  { %28 = vperm.xlu0 %57, %v18_v2  }
   0x7   :  { %p65_p3 = por %p64_p2, %p63_p1 }
   0x9   :  { %p66_p4 = pnand %p65_p3, %p59_p0 }
  0x7d   :  { %v22_v5 = vpop.permute.xlu0 %21 }
  0x7e   :  { %v24_v6 = vsub.f32 %v15_v3, %v22_v5  ;;  %v25_v7 = vsub.f32 %v16_v4, %v22_v5 }
  0x80   :  { %v35_v11 = vadd.f32 %v24_v6, %v22_v5  ;;  %v36_v12 = vadd.f32 %v25_v7, %v22_v5 }
  0x81   :  { %v29_v8 = vpop.permute.xlu0 %28 }
  0x82   :  { %v31_v9 = vmul.f32 %v29_v8, %v24_v6  ;;  %v32_v10 = vmul.f32 %v29_v8, %v25_v7 }
  0x84   :  { %vm33_vm0 = vcmp.gt.f32.partialorder %v31_v9, 0.0  ;;  %vm34_vm1 = vcmp.gt.f32.partialorder %v32_v10, 0.0 }
  0x85   :  { %v37_v13 = vsel %vm33_vm0, %v35_v11, %v22_v5  ;;  %v38_v14 = vsel %vm34_vm1, %v36_v12, %v22_v5 }
  0x86   :  { %39 = vst [vmem:[#allocation2] sm:$0xff] %v37_v13  ;;  %40 = vst [vmem:[#allocation2 + $0x8] sm:$0xff] %v38_v14 }
  0x87   :  { %69 = shalt.err (!%p66_p4)
}
  0x88   :  { %50 = dma.vmem_to_hbm [thread:$0]  %s48_s20, 256, %s120_s3, [#allocation3]  }
  0x89   :  { %78 = dma.done.wait [#allocation3], 256  }
  0x8a   :  { %79 = vsyncadd [#allocation3], 4294967040 }
  0x8b   :  { %54 = vsyncpa [#allocation3], 1 }

</bundles_post_ra>
